<compile_context>
chip_gen: v6e
topology: v6e:2x2x1
jax: 0.10.0
libtpu: 0.0.40
codegen_flags: <defaults>
</compile_context>

<pallas_src>
import jax
import jax.numpy as jnp
from jax.experimental import pallas as pl
from jax.experimental.pallas import tpu as pltpu

# Small, TPU-friendly synthetic shapes.
B = 8            # batch
D = 128          # input features
C = 128          # classifier output classes
NDIV = 4         # number of classifiers (== number of divider classes)
DIV_PAD = 128    # divider block lane-padded to one full vreg width
SLAB = NDIV * C + DIV_PAD   # 640 lanes = 5 * 128


# ----------------------------- fused kernel -------------------------------- #

def fused_kernel(x_ref, wslab_ref, bslab_ref, out_ref):
    x = x_ref[...]                                                     # (B, D) f32

    # ONE lane-dense MXU matmul: heads (NDIV*C lanes) + divider (last 128 lanes).
    logits = jnp.dot(x, wslab_ref[...],
                     preferred_element_type=jnp.float32)               # (B, SLAB)
    logits = logits + bslab_ref[...]                                   # biases fused

    # --- divider.predict(x): argmax over the padded divider lane block ----- #
    dblk = logits[:, NDIV * C:]                                        # (B, 128)
    lane = jax.lax.broadcasted_iota(jnp.int32, dblk.shape, 1)
    dlog = jnp.where(lane < NDIV, dblk, -jnp.inf)                      # mask pad lanes
    m = jnp.max(dlog, axis=-1, keepdims=True)
    cand = jnp.where(dlog == m, lane, jnp.int32(DIV_PAD))              # first-index tie
    divs = jnp.min(cand, axis=-1, keepdims=True)                       # (B, 1) int32

    # --- per-sample head selection (one-hot VPU select, NDIV=4 unrolled) --- #
    onehot = (divs == jax.lax.broadcasted_iota(jnp.int32, (B, NDIV), 1)
              ).astype(jnp.float32)                                    # (B, NDIV)
    acc = jnp.zeros((B, C), jnp.float32)
    for n in range(NDIV):                                              # static unroll
        acc = acc + onehot[:, n:n + 1] * logits[:, n * C:(n + 1) * C]
    out_ref[...] = acc                                                 # lane-dense (B, C)


# ----------------------------- param packing -------------------------------- #

def prepare_params(wd, bd, w_cls, b_cls):
    """Pack all weights/biases into one lane-dense slab.

    Called ONCE at parameter init (outside the jit'd forward) — no per-call
    transpose/reshape HBM copy.
      wd:(D,NDIV) bd:(1,NDIV) w_cls:(NDIV,D,C) b_cls:(NDIV,1,C)
    returns w_slab:(D, SLAB) f32, b_slab:(1, SLAB) f32
    """
    w_heads = jnp.transpose(w_cls, (1, 0, 2)).reshape(D, NDIV * C)     # head n -> lanes n*C:(n+1)*C
    w_slab = jnp.zeros((D, SLAB), jnp.float32)
    w_slab = w_slab.at[:, :NDIV * C].set(w_heads)
    w_slab = w_slab.at[:, NDIV * C:NDIV * C + NDIV].set(wd)

    b_heads = b_cls[:, 0, :].reshape(1, NDIV * C)
    b_slab = jnp.zeros((1, SLAB), jnp.float32)
    b_slab = b_slab.at[:, :NDIV * C].set(b_heads)
    b_slab = b_slab.at[:, NDIV * C:NDIV * C + NDIV].set(bd)
    return w_slab, b_slab


# ------------------------------- forward ------------------------------------ #

@jax.jit
def tau_divide_and_conquer(x, w_slab, b_slab):
    """Forward: divider.predict + per-sample selected classifier. Returns (B, C) logits."""
    return pl.pallas_call(
        fused_kernel,
        # No grid: single step, whole working set (~330 KiB) resident in VMEM.
        out_shape=jax.ShapeDtypeStruct((B, C), jnp.float32),
        in_specs=[pl.BlockSpec(memory_space=pltpu.MemorySpace.VMEM),
                  pl.BlockSpec(memory_space=pltpu.MemorySpace.VMEM),
                  pl.BlockSpec(memory_space=pltpu.MemorySpace.VMEM)],
        out_specs=pl.BlockSpec(memory_space=pltpu.MemorySpace.VMEM),
        cost_estimate=pl.CostEstimate(
            flops=2 * B * D * SLAB,
            transcendentals=0,
            bytes_accessed=4 * (B * D + D * SLAB + SLAB + B * C)),
    )(x, w_slab, b_slab)


# ----------------------------- reference ------------------------------------ #

def reference(x, wd, bd, w_cls, b_cls):
    dlog = x @ wd + bd                                # (B, NDIV)
    divs = jnp.argmax(dlog, axis=-1)                  # (B,)
    w_sel = w_cls[divs]                               # (B, D, C)
    b_sel = b_cls[divs, 0]                            # (B, C)
    out = jnp.einsum("bd,bdc->bc", x, w_sel) + b_sel  # (B, C)
    return out, divs


# ------------------------------- main ---------------------------------------- #

if __name__ == "__main__":
    key = jax.random.PRNGKey(0)
    k_x, k_wd, k_bd, k_w, k_b = jax.random.split(key, 5)

    x = jax.random.normal(k_x, (B, D), dtype=jnp.float32)
    # divider "Linear(D, NDIV)" params
    wd = jax.random.normal(k_wd, (D, NDIV), dtype=jnp.float32) * 0.1
    bd = jax.random.normal(k_bd, (1, NDIV), dtype=jnp.float32) * 0.1
    # classifier_arr: NDIV independent "Linear(D, C)" heads
    w_cls = jax.random.normal(k_w, (NDIV, D, C), dtype=jnp.float32) * 0.1
    b_cls = jax.random.normal(k_b, (NDIV, 1, C), dtype=jnp.float32) * 0.1

    # One-time parameter packing (init-time, not per forward call).
    w_slab, b_slab = prepare_params(wd, bd, w_cls, b_cls)
    w_slab = jax.block_until_ready(w_slab)

    out = tau_divide_and_conquer(x, w_slab, b_slab)
    out = jax.block_until_ready(out)

    out_ref, divs_ref = reference(x, wd, bd, w_cls, b_cls)
    assert jnp.allclose(out, out_ref, atol=1e-4, rtol=1e-4), "logits mismatch"

    print("KERNEL_OK")
</pallas_src>

<mosaic_0001>
module attributes {stable_mosaic.version = 11 : i64} {
  func.func @fused_kernel(%arg0: memref<8x128xf32, #tpu.memory_space<vmem>>, %arg1: memref<128x640xf32, #tpu.memory_space<vmem>>, %arg2: memref<1x640xf32, #tpu.memory_space<vmem>>, %arg3: memref<8x128xf32, #tpu.memory_space<vmem>>) attributes {dimension_semantics = [], scalar_prefetch = 0 : i64, scratch_operands = 0 : i64, tpu.core_type = #tpu.core_type<tc>} {
    %c0 = arith.constant 0 : index
    %c0_0 = arith.constant 0 : index
    %0 = vector.load %arg0[%c0, %c0_0] : memref<8x128xf32, #tpu.memory_space<vmem>>, vector<8x128xf32>
    %c0_1 = arith.constant 0 : index
    %c0_2 = arith.constant 0 : index
    %1 = vector.load %arg1[%c0_1, %c0_2] : memref<128x640xf32, #tpu.memory_space<vmem>>, vector<128x640xf32>
    %cst = arith.constant dense<0.000000e+00> : vector<8x640xf32>
    %2 = tpu.matmul %0, %1, %cst {dimension_numbers = #tpu.dot_dimension_numbers<[1], [0], [0], [1], [0, 0, 1, 1], [], []>} : vector<8x128xf32>, vector<128x640xf32>, vector<8x640xf32> -> vector<8x640xf32>
    %c0_3 = arith.constant 0 : index
    %c0_4 = arith.constant 0 : index
    %3 = vector.load %arg2[%c0_3, %c0_4] : memref<1x640xf32, #tpu.memory_space<vmem>>, vector<1x640xf32>
    %4 = vector.broadcast %3 : vector<1x640xf32> to vector<8x640xf32>
    %5 = arith.addf %2, %4 : vector<8x640xf32>
    %6 = vector.extract_strided_slice %5 {offsets = [0, 512], sizes = [8, 128], strides = [1, 1]} : vector<8x640xf32> to vector<8x128xf32>
    %7 = tpu.iota {dimensions = array<i32: 1>} : vector<8x128xi32>
    %c4_i32 = arith.constant 4 : i32
    %8 = vector.broadcast %c4_i32 : i32 to vector<8x128xi32>
    %9 = arith.cmpi slt, %7, %8 : vector<8x128xi32>
    %cst_5 = arith.constant 0xFF800000 : f32
    %10 = vector.broadcast %cst_5 : f32 to vector<8x128xf32>
    %11 = arith.select %9, %6, %10 : vector<8x128xi1>, vector<8x128xf32>
    %cst_6 = arith.constant dense<0xFF800000> : vector<8xf32>
    %12 = vector.multi_reduction <maximumf>, %11, %cst_6 [1] : vector<8x128xf32> to vector<8xf32>
    %13 = vector.shape_cast %12 : vector<8xf32> to vector<8x1xf32>
    %14 = vector.broadcast %13 : vector<8x1xf32> to vector<8x128xf32>
    %15 = arith.cmpf oeq, %11, %14 : vector<8x128xf32>
    %c128_i32 = arith.constant 128 : i32
    %16 = vector.broadcast %c128_i32 : i32 to vector<8x128xi32>
    %17 = arith.select %15, %7, %16 : vector<8x128xi1>, vector<8x128xi32>
    %cst_7 = arith.constant dense<2147483647> : vector<8xi32>
    %18 = vector.multi_reduction <minsi>, %17, %cst_7 [1] : vector<8x128xi32> to vector<8xi32>
    %19 = vector.shape_cast %18 : vector<8xi32> to vector<8x1xi32>
    %20 = tpu.iota {dimensions = array<i32: 1>} : vector<8x4xi32>
    %21 = vector.broadcast %19 : vector<8x1xi32> to vector<8x4xi32>
    %22 = arith.cmpi eq, %21, %20 : vector<8x4xi32>
    %23 = arith.extui %22 : vector<8x4xi1> to vector<8x4xi32>
    %24 = arith.sitofp %23 : vector<8x4xi32> to vector<8x4xf32>
    %cst_8 = arith.constant 0.000000e+00 : f32
    %25 = vector.broadcast %cst_8 : f32 to vector<8x128xf32>
    %26 = vector.extract_strided_slice %24 {offsets = [0, 0], sizes = [8, 1], strides = [1, 1]} : vector<8x4xf32> to vector<8x1xf32>
    %27 = vector.extract_strided_slice %5 {offsets = [0, 0], sizes = [8, 128], strides = [1, 1]} : vector<8x640xf32> to vector<8x128xf32>
    %28 = vector.broadcast %26 : vector<8x1xf32> to vector<8x128xf32>
    %29 = arith.mulf %28, %27 : vector<8x128xf32>
    %30 = arith.addf %25, %29 : vector<8x128xf32>
    %31 = vector.extract_strided_slice %24 {offsets = [0, 1], sizes = [8, 1], strides = [1, 1]} : vector<8x4xf32> to vector<8x1xf32>
    %32 = vector.extract_strided_slice %5 {offsets = [0, 128], sizes = [8, 128], strides = [1, 1]} : vector<8x640xf32> to vector<8x128xf32>
    %33 = vector.broadcast %31 : vector<8x1xf32> to vector<8x128xf32>
    %34 = arith.mulf %33, %32 : vector<8x128xf32>
    %35 = arith.addf %30, %34 : vector<8x128xf32>
    %36 = vector.extract_strided_slice %24 {offsets = [0, 2], sizes = [8, 1], strides = [1, 1]} : vector<8x4xf32> to vector<8x1xf32>
    %37 = vector.extract_strided_slice %5 {offsets = [0, 256], sizes = [8, 128], strides = [1, 1]} : vector<8x640xf32> to vector<8x128xf32>
    %38 = vector.broadcast %36 : vector<8x1xf32> to vector<8x128xf32>
    %39 = arith.mulf %38, %37 : vector<8x128xf32>
    %40 = arith.addf %35, %39 : vector<8x128xf32>
    %41 = vector.extract_strided_slice %24 {offsets = [0, 3], sizes = [8, 1], strides = [1, 1]} : vector<8x4xf32> to vector<8x1xf32>
    %42 = vector.extract_strided_slice %5 {offsets = [0, 384], sizes = [8, 128], strides = [1, 1]} : vector<8x640xf32> to vector<8x128xf32>
    %43 = vector.broadcast %41 : vector<8x1xf32> to vector<8x128xf32>
    %44 = arith.mulf %43, %42 : vector<8x128xf32>
    %45 = arith.addf %40, %44 : vector<8x128xf32>
    %c0_9 = arith.constant 0 : index
    %c0_10 = arith.constant 0 : index
    %46 = vector.load %arg3[%c0_9, %c0_10] : memref<8x128xf32, #tpu.memory_space<vmem>>, vector<8x128xf32>
    tpu.vector_store %arg3[%c0_9, %c0_10], %45 {strides = array<i32>} : memref<8x128xf32, #tpu.memory_space<vmem>>, vector<8x128xf32>,
    return
  }
}

</mosaic_0001>

<bundles_post_ra>
// kernel: tau_divide_and_conquer.1
= control target key start
LH: loop header
LB: loop body
LE: loop exit
PB: predicated region body
PF: predicated region fallthrough
CT: control target
= control target key end

     0   :  { %8 = vsyncpa [#allocation3], 0  ;;  %s697_s0 = inlined_call_operand.hbm [shape: f32[8,128], index: 0, kind: input, shape index: {}]   ;;  %s698_s1 = inlined_call_operand.hbm [shape: f32[128,640], index: 1, kind: input, shape index: {}]   ;;  %s699_s2 = inlined_call_operand.hbm [shape: f32[1,640], index: 2, kind: input, shape index: {}]   ;;  %s700_s3 = inlined_call_operand.hbm [shape: f32[8,128], index: 3, kind: output, shape index: {}]  }
   0x1   :  { %9 = vsyncpa [#allocation6], 0 }
   0x2   :  { %10 = vsyncpa [#allocation4], 0  ;;  %s595_s12 = smov [#allocation5]  }
   0x3   :  { %s26_s13 = sshll.u32 %s595_s12, 4  ;;  %s27_s13 = int_to_ptr.vmem [resolvable:$true] %s26_s13 }
   0x4   :  { %s517_s14 = scalar_lea.vmem %s27_s13, 10240  ;;  %p522_p1 = scmp.lt.s32.totalorder %s27_s13, %s27_s13 }
   0x5   :  { %p518_p0 = scmp.ne.s32.totalorder %s27_s13, %s517_s14  ;;  %p523_p2 = scmp.lt.s32.totalorder %s517_s14, %s517_s14 }
   0x7   :  { %p524_p3 = por %p523_p2, %p522_p1 }
   0x9   :  { %p525_p4 = pnand %p524_p3, %p518_p0 }
   0xb   :  { %528 = shalt.err (!%p525_p4)
}
   0xc   :  { %s596_s15 = smov 640   ;;  %s597_s16 = smov 40  }
   0xd   :  { %32 = dma.hbm_to_vmem [thread:$0]  %s698_s1, 10240, %s27_s13, [#allocation6], %s596_s15, %s596_s15, %s597_s16  }
   0xe   :  { %s598_s19 = smov [#allocation2]   ;;  %s599_s21 = smov [#allocation7]  }
   0xf   :  { %s17_s20 = sshll.u32 %s598_s19, 4  ;;  %s39_s22 = sshll.u32 %s599_s21, 4  ;;  %s18_s20 = int_to_ptr.vmem [resolvable:$true] %s17_s20  ;;  %s40_s22 = int_to_ptr.vmem [resolvable:$true] %s39_s22 }
  0x10   :  { %s537_s23 = scalar_lea.vmem %s18_s20, 128  ;;  %p542_p6 = scmp.lt.s32.totalorder %s18_s20, %s18_s20 }
  0x11   :  { %p538_p5 = scmp.ne.s32.totalorder %s18_s20, %s537_s23  ;;  %p543_p7 = scmp.lt.s32.totalorder %s537_s23, %s537_s23 }
  0x13   :  { %p544_p8 = por %p543_p7, %p542_p6 }
  0x15   :  { %p545_p9 = pnand %p544_p8, %p538_p5 }
  0x17   :  { %548 = shalt.err (!%p545_p9)
}
  0x18   :  { %20 = dma.hbm_to_vmem [thread:$0]  %s697_s0, 128, %s18_s20, [#allocation3]  }
  0x19   :  { %s557_s26 = scalar_lea.vmem %s40_s22, 80  ;;  %s561_s1 = scalar_lea.vmem %s40_s22, 96 }
  0x1a   :  { %p558_p10 = scmp.ne.s32.totalorder %s40_s22, %s557_s26  ;;  %p562_p11 = scmp.lt.s32.totalorder %s40_s22, %s40_s22 }
  0x1b   :  { %p563_p12 = scmp.lt.s32.totalorder %s561_s1, %s557_s26 }
  0x1d   :  { %p564_p13 = por %p563_p12, %p562_p11 }
  0x1f   :  { %p565_p0 = pnand %p564_p13, %p558_p10 }
  0x21   :  { %568 = shalt.err (!%p565_p0)
}
  0x22   :  { %42 = dma.hbm_to_vmem [thread:$0]  %s699_s2, 80, %s40_s22, [#allocation6]  }
  0x23   :  { %589 = dma.done.wait [#allocation3], 128  }
  0x24   :  { %590 = vsyncadd [#allocation3], 4294967168 }
  0x25   :  { %591 = dma.done.wait [#allocation6], 10320  }
  0x26   :  { %592 = vsyncadd [#allocation6], 4294956976  ;;  %v600_v0 = vmov 0.0   ;;  %v129_v1 = vld [vmem:[#allocation5 + $0x260] sm:$0xff]  ;;  %v128_v2 = vld [vmem:[#allocation5 + $0x258] sm:$0xff]  ;;  %vm601_vm0 = vmmov 0   ;;  %v135_v50 = vlaneseq }
  0x27   :  { %224 = vmatprep.mubr.f32.mxu0 %v600_v0  ;;  %295 = vmatprep.mubr.f32.mxu1 %v600_v0  ;;  %v124_v3 = vld [vmem:[#allocation5 + $0x238] sm:$0xff]  ;;  %v123_v4 = vld [vmem:[#allocation5 + $0x230] sm:$0xff]  ;;  %v118_v6 = vld [vmem:[#allocation5 + $0x208] sm:$0xff]  ;;  %s606_s0 = smov [#allocation8]  }
  0x28   :  { %160 = vmatprep.subr.mxu0 %v129_v1  ;;  %v119_v5 = vld [vmem:[#allocation5 + $0x210] sm:$0xff]  ;;  %v114_v7 = vld [vmem:[#allocation5 + $0x1e8] sm:$0xff]  ;;  %v113_v8 = vld [vmem:[#allocation5 + $0x1e0] sm:$0xff]  ;;  %v659_v51 = vshrl.u32 %v135_v50, 7  ;;  %v666_v55 = vand.u32 127, %v135_v50  ;;  %s429_s2 = sshll.u32 %s606_s0, 4  ;;  %s430_s2 = int_to_ptr.vmem [resolvable:$true] %s429_s2 }
  0x29   :  { %161 = vmatpush1.msra.mxu0 %v128_v2  ;;  %v109_v9 = vld [vmem:[#allocation5 + $0x1c0] sm:$0xff]  ;;  %v108_v10 = vld [vmem:[#allocation5 + $0x1b8] sm:$0xff]  ;;  %v103_v12 = vld [vmem:[#allocation5 + $0x190] sm:$0xff]  ;;  %s569_s29 = scalar_lea.vmem %s430_s2, 128  ;;  %p574_p2 = scmp.lt.s32.totalorder %s430_s2, %s430_s2 }
  0x2a   :  { %162 = vmatprep.subr.mxu0 %v124_v3  ;;  %v104_v11 = vld [vmem:[#allocation5 + $0x198] sm:$0xff]  ;;  %v99_v13 = vld [vmem:[#allocation5 + $0x170] sm:$0xff]  ;;  %v98_v14 = vld [vmem:[#allocation5 + $0x168] sm:$0xff]  ;;  %v153_v52 = vsub.s32 4, %v659_v51  ;;  %vm374_vm1 = vcmp.lt.s32.totalorder %v666_v55, 4  ;;  %v141_v50 = vsub.s32 1, %v659_v51  ;;  %p570_p1 = scmp.ne.s32.totalorder %s430_s2, %s569_s29  ;;  %p575_p3 = scmp.lt.s32.totalorder %s569_s29, %s569_s29 }
  0x2b   :  { %163 = vmatpush1.msra.mxu0 %v123_v4  ;;  %v94_v15 = vld [vmem:[#allocation5 + $0x148] sm:$0xff]  ;;  %v93_v16 = vld [vmem:[#allocation5 + $0x140] sm:$0xff]  ;;  %v88_v18 = vld [vmem:[#allocation5 + $0x118] sm:$0xff] }
  0x2c   :  { %164 = vmatprep.subr.mxu0 %v119_v5  ;;  %v89_v17 = vld [vmem:[#allocation5 + $0x120] sm:$0xff]  ;;  %v84_v19 = vld [vmem:[#allocation5 + $0xf8] sm:$0xff]  ;;  %v83_v20 = vld [vmem:[#allocation5 + $0xf0] sm:$0xff]  ;;  %p576_p4 = por %p575_p3, %p574_p2 }
  0x2d   :  { %165 = vmatpush1.msra.mxu0 %v118_v6  ;;  %v79_v21 = vld [vmem:[#allocation5 + $0xd0] sm:$0xff]  ;;  %v78_v22 = vld [vmem:[#allocation5 + $0xc8] sm:$0xff]  ;;  %v73_v24 = vld [vmem:[#allocation5 + $0xa0] sm:$0xff] }
  0x2e   :  { %166 = vmatprep.subr.mxu0 %v114_v7  ;;  %v74_v23 = vld [vmem:[#allocation5 + $0xa8] sm:$0xff]  ;;  %v69_v25 = vld [vmem:[#allocation5 + $0x80] sm:$0xff]  ;;  %v68_v26 = vld [vmem:[#allocation5 + $0x78] sm:$0xff]  ;;  %p577_p5 = pnand %p576_p4, %p570_p1 }
  0x2f   :  { %167 = vmatpush1.msra.mxu0 %v113_v8  ;;  %v64_v27 = vld [vmem:[#allocation5 + $0x58] sm:$0xff]  ;;  %v63_v28 = vld [vmem:[#allocation5 + $0x50] sm:$0xff]  ;;  %v58_v30 = vld [vmem:[#allocation5 + $0x28] sm:$0xff] }
  0x30   :  { %168 = vmatprep.subr.mxu0 %v109_v9  ;;  %v59_v29 = vld [vmem:[#allocation5 + $0x30] sm:$0xff]  ;;  %v54_v31 = vld [vmem:[#allocation5 + $0x8] sm:$0xff]  ;;  %v53_v32 = vld [vmem:[#allocation5] sm:$0xff] }
  0x31   :  { %169 = vmatpush1.msra.mxu0 %v108_v10  ;;  %v638_v33 = vld [vmem:[#allocation2] sm:$0xff]  ;;  %v127_v35 = vld [vmem:[#allocation5 + $0x250] sm:$0xff]  ;;  %v122_v36 = vld [vmem:[#allocation5 + $0x228] sm:$0xff] }
  0x32   :  { %170 = vmatprep.subr.mxu0 %v104_v11  ;;  %v132_v34 = vld [vmem:[#allocation5 + $0x278] sm:$0xff]  ;;  %v117_v37 = vld [vmem:[#allocation5 + $0x200] sm:$0xff]  ;;  %v107_v39 = vld [vmem:[#allocation5 + $0x1b0] sm:$0xff] }
  0x33   :  { %171 = vmatpush1.msra.mxu0 %v103_v12  ;;  %v112_v38 = vld [vmem:[#allocation5 + $0x1d8] sm:$0xff]  ;;  %v102_v40 = vld [vmem:[#allocation5 + $0x188] sm:$0xff]  ;;  %v97_v41 = vld [vmem:[#allocation5 + $0x160] sm:$0xff] }
  0x34   :  { %172 = vmatprep.subr.mxu0 %v99_v13  ;;  %v92_v42 = vld [vmem:[#allocation5 + $0x138] sm:$0xff]  ;;  %v87_v43 = vld [vmem:[#allocation5 + $0x110] sm:$0xff]  ;;  %v82_v44 = vld [vmem:[#allocation5 + $0xe8] sm:$0xff] }
  0x35   :  { %173 = vmatpush1.msra.mxu0 %v98_v14  ;;  %v77_v45 = vld [vmem:[#allocation5 + $0xc0] sm:$0xff]  ;;  %v72_v46 = vld [vmem:[#allocation5 + $0x98] sm:$0xff]  ;;  %v67_v47 = vld [vmem:[#allocation5 + $0x70] sm:$0xff] }
  0x36   :  { %174 = vmatprep.subr.mxu0 %v94_v15  ;;  %v62_v48 = vld [vmem:[#allocation5 + $0x48] sm:$0xff]  ;;  %v57_v49 = vld [vmem:[#allocation5 + $0x20] sm:$0xff]  ;;  %v131_v3 = vld [vmem:[#allocation5 + $0x270] sm:$0xff] }
  0x37   :  { %175 = vmatpush1.msra.mxu0 %v93_v16  ;;  %v664_v54 = vld [vmem:[#allocation7] sm:$0x1f]  ;;  %v130_v4 = vld [vmem:[#allocation5 + $0x268] sm:$0xff]  ;;  %231 = vmatprep.subr.mxu1 %v131_v3  ;;  %v120_v8 = vld [vmem:[#allocation5 + $0x218] sm:$0xff] }
  0x38   :  { %176 = vmatprep.subr.mxu0 %v89_v17  ;;  %v154_v56 = vrot.slane %v664_v54, %v153_v52  ;;  %v126_v5 = vld [vmem:[#allocation5 + $0x248] sm:$0xff]  ;;  %v125_v6 = vld [vmem:[#allocation5 + $0x240] sm:$0xff]  ;;  %232 = vmatpush1.msra.mxu1 %v130_v4  ;;  %v116_v9 = vld [vmem:[#allocation5 + $0x1f8] sm:$0xff] }
  0x39   :  { %177 = vmatpush1.msra.mxu0 %v88_v18  ;;  %v121_v7 = vld [vmem:[#allocation5 + $0x220] sm:$0xff]  ;;  %233 = vmatprep.subr.mxu1 %v126_v5  ;;  %v115_v10 = vld [vmem:[#allocation5 + $0x1f0] sm:$0xff]  ;;  %v110_v12 = vld [vmem:[#allocation5 + $0x1c8] sm:$0xff] }
  0x3a   :  { %178 = vmatprep.subr.mxu0 %v84_v19  ;;  %234 = vmatpush1.msra.mxu1 %v125_v6  ;;  %v111_v11 = vld [vmem:[#allocation5 + $0x1d0] sm:$0xff]  ;;  %v106_v13 = vld [vmem:[#allocation5 + $0x1a8] sm:$0xff]  ;;  %v105_v14 = vld [vmem:[#allocation5 + $0x1a0] sm:$0xff] }
  0x3b   :  { %179 = vmatpush1.msra.mxu0 %v83_v20  ;;  %235 = vmatprep.subr.mxu1 %v121_v7  ;;  %v101_v15 = vld [vmem:[#allocation5 + $0x180] sm:$0xff]  ;;  %v100_v16 = vld [vmem:[#allocation5 + $0x178] sm:$0xff]  ;;  %v95_v18 = vld [vmem:[#allocation5 + $0x150] sm:$0xff] }
  0x3c   :  { %180 = vmatprep.subr.mxu0 %v79_v21  ;;  %236 = vmatpush1.msra.mxu1 %v120_v8  ;;  %v96_v17 = vld [vmem:[#allocation5 + $0x158] sm:$0xff]  ;;  %v91_v19 = vld [vmem:[#allocation5 + $0x130] sm:$0xff]  ;;  %v90_v20 = vld [vmem:[#allocation5 + $0x128] sm:$0xff] }
  0x3d   :  { %181 = vmatpush1.msra.mxu0 %v78_v22  ;;  %237 = vmatprep.subr.mxu1 %v116_v9  ;;  %v86_v21 = vld [vmem:[#allocation5 + $0x108] sm:$0xff]  ;;  %v85_v22 = vld [vmem:[#allocation5 + $0x100] sm:$0xff] }
  0x3e   :  { %182 = vmatprep.subr.mxu0 %v74_v23  ;;  %238 = vmatpush1.msra.mxu1 %v115_v10  ;;  %v81_v23 = vld [vmem:[#allocation5 + $0xe0] sm:$0xff] }
  0x3f   :  { %183 = vmatpush1.msra.mxu0 %v73_v24  ;;  %239 = vmatprep.subr.mxu1 %v111_v11  ;;  %v80_v24 = vld [vmem:[#allocation5 + $0xd8] sm:$0xff] }
  0x40   :  { %184 = vmatprep.subr.mxu0 %v69_v25  ;;  %240 = vmatpush1.msra.mxu1 %v110_v12  ;;  %v76_v25 = vld [vmem:[#allocation5 + $0xb8] sm:$0xff] }
  0x41   :  { %185 = vmatpush1.msra.mxu0 %v68_v26  ;;  %241 = vmatprep.subr.mxu1 %v106_v13  ;;  %v75_v26 = vld [vmem:[#allocation5 + $0xb0] sm:$0xff] }
  0x42   :  { %186 = vmatprep.subr.mxu0 %v64_v27  ;;  %242 = vmatpush1.msra.mxu1 %v105_v14  ;;  %v71_v27 = vld [vmem:[#allocation5 + $0x90] sm:$0xff] }
  0x43   :  { %187 = vmatpush1.msra.mxu0 %v63_v28  ;;  %243 = vmatprep.subr.mxu1 %v101_v15  ;;  %v70_v28 = vld [vmem:[#allocation5 + $0x88] sm:$0xff] }
  0x44   :  { %188 = vmatprep.subr.mxu0 %v59_v29  ;;  %244 = vmatpush1.msra.mxu1 %v100_v16  ;;  %v66_v29 = vld [vmem:[#allocation5 + $0x68] sm:$0xff] }
  0x45   :  { %189 = vmatpush1.msra.mxu0 %v58_v30  ;;  %245 = vmatprep.subr.mxu1 %v96_v17  ;;  %v65_v30 = vld [vmem:[#allocation5 + $0x60] sm:$0xff] }
  0x46   :  { %190 = vmatprep.subr.mxu0 %v54_v31  ;;  %246 = vmatpush1.msra.mxu1 %v95_v18  ;;  %v61_v31 = vld [vmem:[#allocation5 + $0x40] sm:$0xff] }
  0x47   :  { %191 = vmatpush1.msra.mxu0 %v53_v32  ;;  %247 = vmatprep.subr.mxu1 %v91_v19  ;;  %v60_v32 = vld [vmem:[#allocation5 + $0x38] sm:$0xff] }
  0x48   :  { %225 = vmatmul.mubr.f32.vlgmr.msra.gmra.mxu0 %v638_v33  ;;  %457 = vmatprep.subr.mxu0 %v600_v0 }
  0x49   :  { %458 = vmatpush3.msra.mxu0 %v132_v34  ;;  %489 = vmatprep.mubr.msk.f32.mxu0 %vm601_vm0, %v600_v0  ;;  %v56_v34 = vld [vmem:[#allocation5 + $0x18] sm:$0xff] }
  0x4a   :  { %459 = vmatprep.subr.mxu0 %v600_v0  ;;  %248 = vmatpush1.msra.mxu1 %v90_v20 }
  0x4b   :  { %460 = vmatpush3.msra.mxu0 %v127_v35  ;;  %249 = vmatprep.subr.mxu1 %v86_v21  ;;  %v55_v35 = vld [vmem:[#allocation5 + $0x10] sm:$0xff] }
  0x4c   :  { %461 = vmatprep.subr.mxu0 %v600_v0  ;;  %250 = vmatpush1.msra.mxu1 %v85_v22 }
  0x4d   :  { %462 = vmatpush3.msra.mxu0 %v122_v36  ;;  %251 = vmatprep.subr.mxu1 %v81_v23 }
  0x4e   :  { %463 = vmatprep.subr.mxu0 %v600_v0  ;;  %252 = vmatpush1.msra.mxu1 %v80_v24 }
  0x4f   :  { %464 = vmatpush3.msra.mxu0 %v117_v37  ;;  %253 = vmatprep.subr.mxu1 %v76_v25 }
  0x50   :  { %465 = vmatprep.subr.mxu0 %v600_v0  ;;  %254 = vmatpush1.msra.mxu1 %v75_v26 }
  0x51   :  { %466 = vmatpush3.msra.mxu0 %v112_v38  ;;  %255 = vmatprep.subr.mxu1 %v71_v27 }
  0x52   :  { %467 = vmatprep.subr.mxu0 %v600_v0  ;;  %256 = vmatpush1.msra.mxu1 %v70_v28 }
  0x53   :  { %468 = vmatpush3.msra.mxu0 %v107_v39  ;;  %257 = vmatprep.subr.mxu1 %v66_v29 }
  0x54   :  { %469 = vmatprep.subr.mxu0 %v600_v0  ;;  %258 = vmatpush1.msra.mxu1 %v65_v30 }
  0x55   :  { %470 = vmatpush3.msra.mxu0 %v102_v40  ;;  %259 = vmatprep.subr.mxu1 %v61_v31  ;;  %v602_v40 = vmov 1  }
  0x56   :  { %471 = vmatprep.subr.mxu0 %v600_v0  ;;  %260 = vmatpush1.msra.mxu1 %v60_v32 }
  0x57   :  { %472 = vmatpush3.msra.mxu0 %v97_v41  ;;  %261 = vmatprep.subr.mxu1 %v56_v34  ;;  %v603_v41 = vmov 0  }
  0x58   :  { %473 = vmatprep.subr.mxu0 %v600_v0  ;;  %262 = vmatpush1.msra.mxu1 %v55_v35 }
  0x59   :  { %474 = vmatpush3.msra.mxu0 %v92_v42  ;;  %296 = vmatmul.mubr.f32.vlgmr.msra.gmra.mxu1 %v638_v33 }
  0x5a   :  { %475 = vmatprep.subr.mxu0 %v600_v0  ;;  %505 = vset.pattern.permute.xlu0 %v602_v40 }
  0x5b   :  { %476 = vmatpush3.msra.mxu0 %v87_v43  ;;  %504 = vset.pattern.permute.xlu1 %v603_v41 }
  0x5c   :  { %477 = vmatprep.subr.mxu0 %v600_v0 }
  0x5d   :  { %478 = vmatpush3.msra.mxu0 %v82_v44 }
  0x5e   :  { %479 = vmatprep.subr.mxu0 %v600_v0 }
  0x5f   :  { %480 = vmatpush3.msra.mxu0 %v77_v45 }
  0x60   :  { %481 = vmatprep.subr.mxu0 %v600_v0 }
  0x61   :  { %482 = vmatpush3.msra.mxu0 %v72_v46 }
  0x62   :  { %483 = vmatprep.subr.mxu0 %v600_v0 }
  0x63   :  { %484 = vmatpush3.msra.mxu0 %v67_v47  ;;  %v604_v47 = vmov 2  }
  0x64   :  { %485 = vmatprep.subr.mxu0 %v600_v0 }
  0x65   :  { %486 = vmatpush3.msra.mxu0 %v62_v48  ;;  %v605_v48 = vmov 3  }
  0x66   :  { %487 = vmatprep.subr.mxu0 %v600_v0 }
  0x67   :  { %488 = vmatpush3.msra.mxu0 %v57_v49  ;;  %v137_v49 = vsub.s32 0, %v659_v51 }
  0x68   :  { %490 = vmatmul.mubr.f32.vlgmr.msra.gmra.mxu0 %v638_v33 }
  0x69   :  { %v138_v52 = vrot.slane %v664_v54, %v137_v49 }
 0x108   :  { %v662_v53 = vpop.f32.mrf.mxu0 }
 0x10a   :  { %v669_v57 = vpop.f32.mrf.mxu0 }
 0x128   :  { %v368_v58 = vpop.f32.mrf.mxu0 }
 0x129   :  { %v369_v59 = vadd.f32 %v368_v58, %v154_v56  ;;  %v142_v56 = vrot.slane %v664_v54, %v141_v50 }
 0x12a   :  { %v491_v60 = vpop.f32.mrf.mxu0 }
 0x12b   :  { %v375_v61 = vsel %vm374_vm1, %v369_v59, -inf  ;;  %v229_v58 = vadd.f32 %v669_v57, %v142_v56  ;;  %v297_v60 = vpop.f32.mrf.mxu1 }
 0x12c   :  { %376 = vmax.xlane.f32.xlu0 %v375_v61 }
 0x12d   :  { %v299_v7 = vpop.f32.mrf.mxu1 }
 0x1b5   :  { %v377_v62 = vpop.xlane.xlu0 %376 }
 0x1b6   :  { %vm378_vm2 = vcmp.eq.f32.partialorder %v375_v61, %v377_v62 }
 0x1b7   :  { %v673_v63 = vsel %vm378_vm2, %v666_v55, 128 }
 0x1b8   :  { %v381_v1 = vshra.s32 %v673_v63, 16  ;;  %v380_v36 = vand.u32 65535, %v673_v63 }
 0x1ba   :  { %v676_v2 = vcvt.s32.f32 %v381_v1  ;;  %v382_v38 = vcvt.s32.f32 %v380_v36 }
 0x1bc   :  { %384 = vmin.xlane.f32.xlu0 %v676_v2 }
 0x245   :  { %v385_v37 = vpop.xlane.xlu0 %384 }
 0x246   :  { %vm386_vm3 = vcmp.eq.f32.partialorder %v676_v2, %v385_v37  ;;  %v391_v42 = vcvt.f32.s32 %v385_v37  ;;  %v149_v2 = vsub.s32 3, %v659_v51 }
 0x247   :  { %v387_v39 = vsel %vm386_vm3, %v382_v38, inf }
 0x248   :  { %388 = vmin.xlane.f32.xlu1 %v387_v39  ;;  %v392_v44 = vshll.u32 %v391_v42, 16  ;;  %v150_v6 = vrot.slane %v664_v54, %v149_v2 }
 0x24a   :  { %v300_v9 = vadd.f32 %v299_v7, %v150_v6 }
 0x2d1   :  { %v389_v43 = vpop.xlane.xlu1 %388 }
 0x2d2   :  { %v390_v45 = vcvt.f32.s32 %v389_v43 }
 0x2d4   :  { %v393_v46 = vadd.s32 %v392_v44, %v390_v45 }
 0x2d6   :  { %vm394_vm4 = vcmp.eq.s32.totalorder %v393_v46, %v666_v55  ;;  %v145_v55 = vsub.s32 2, %v659_v51 }
 0x2d7   :  { %v439_v33 = vsel %vm394_vm4, 1.0, %v600_v0  ;;  %v227_v0 = vadd.f32 %v662_v53, %v138_v52 }
 0x2d8   :  { %405 = vperm.xlu0 %505, %v439_v33   ;;  %399 = vperm.xlu1 %504, %v439_v33   ;;  %v146_v59 = vrot.slane %v664_v54, %v145_v55 }
 0x2da   :  { %v298_v4 = vadd.f32 %v297_v60, %v146_v59 }
 0x2dc   :  { %506 = vset.pattern.permute.xlu1 %v604_v47  ;;  %508 = vset.pattern.permute.xlu0 %v605_v48 }
 0x2dd   :  { %411 = vperm.xlu1 %506, %v439_v33  }
 0x2e1   :  { %507 = vset.pattern.permute.xlu1 %v605_v48 }
 0x2e2   :  { %417 = vperm.xlu1 %507, %v439_v33  }
 0x353   :  { %v406_v61 = vpop.permute.xlu0 %405  ;;  %v400_v62 = vpop.permute.xlu1 %399 }
 0x354   :  { %v408_v63 = vmul.f32 %v406_v61, %v229_v58  ;;  %v402_v1 = vmul.f32 %v400_v62, %v227_v0 }
 0x356   :  { %v409_v3 = vadd.f32 %v408_v63, %v402_v1 }
 0x358   :  { %v412_v5 = vpop.permute.xlu1 %411 }
 0x359   :  { %v414_v8 = vmul.f32 %v412_v5, %v298_v4 }
 0x35b   :  { %v415_v57 = vadd.f32 %v414_v8, %v409_v3 }
 0x35d   :  { %v418_v53 = vpop.permute.xlu1 %417 }
 0x35e   :  { %v420_v10 = vmul.f32 %v418_v53, %v300_v9 }
 0x360   :  { %v421_v11 = vadd.f32 %v420_v10, %v415_v57 }
 0x362   :  { %422 = vst [vmem:[#allocation8] sm:$0xff] %v421_v11 }
 0x363   :  { %580 = shalt.err (!%p577_p5)
}
 0x364   :  { %432 = dma.vmem_to_hbm [thread:$0]  %s430_s2, 128, %s700_s3, [#allocation4]  }
 0x365   :  { %593 = dma.done.wait [#allocation4], 128  }
 0x366   :  { %594 = vsyncadd [#allocation4], 4294967168 }
 0x367   :  { %436 = vsyncpa [#allocation3], 1 }
 0x368   :  { %437 = vsyncpa [#allocation6], 1 }
 0x369   :  { %438 = vsyncpa [#allocation4], 1 }

</bundles_post_ra>
